<compile_context>
chip_gen: v6e
topology: v6e:2x2x1
jax: 0.10.0
libtpu: 0.0.40
codegen_flags: <defaults>
</compile_context>

<pallas_src>
import jax
import jax.numpy as jnp
from jax.experimental import pallas as pl
from jax.experimental.pallas import tpu as pltpu


def _round_up(x, m):
    return ((x + m - 1) // m) * m


def _cdiv(a, b):
    return (a + b - 1) // b


def _vmem_capacity_bytes():
    """Physical per-core VMEM; v7x-safe 64 MiB fallback if the query fails."""
    try:
        cap = int(getattr(pltpu.get_tpu_info(), "vmem_capacity_bytes", 0))
    except Exception:
        cap = 0
    return cap if cap > 0 else 64 * 1024 * 1024


# --------------------------------------------------------------------------- #
# Pass 1: logits = x @ W + b  (output-stationary over K) and per-row
#         logsumexp via online max / sum-exp carried across vocab tiles.
# --------------------------------------------------------------------------- #
def _logits_lse_kernel(x_ref, w_ref, b_ref, logits_ref, lse_ref,
                       acc_ref, m_ref, l_ref):
    j = pl.program_id(1)          # vocab tile
    k = pl.program_id(2)          # K (d_model) tile
    nj = pl.num_programs(1)
    nk = pl.num_programs(2)

    @pl.when((j == 0) & (k == 0))
    def _():
        # New row tile: reset the online softmax stats.
        m_ref[...] = jnp.full(m_ref.shape, -jnp.inf, m_ref.dtype)
        l_ref[...] = jnp.zeros(l_ref.shape, l_ref.dtype)

    @pl.when(k == 0)
    def _():
        acc_ref[...] = jnp.zeros(acc_ref.shape, acc_ref.dtype)

    # bf16 operands, f32 accumulation on the MXU.
    acc_ref[...] += jnp.dot(x_ref[...], w_ref[...],
                            preferred_element_type=jnp.float32)

    @pl.when(k == nk - 1)
    def _():
        # Bias added exactly once, after the full K reduction (f32).
        logits = acc_ref[...] + b_ref[...]
        logits_ref[...] = logits

        # Online logsumexp update across vocab tiles (all f32).
        m_old = m_ref[...]
        m_new = jnp.maximum(m_old, jnp.max(logits, axis=-1, keepdims=True))
        l_ref[...] = l_ref[...] * jnp.exp(m_old - m_new) + jnp.sum(
            jnp.exp(logits - m_new), axis=-1, keepdims=True)
        m_ref[...] = m_new

        @pl.when(j == nj - 1)
        def _():
            lse_ref[...] = m_ref[...] + jnp.log(l_ref[...])


# --------------------------------------------------------------------------- #
# Pass 2: out = logits - lse  (cheap elementwise normalization sweep).
# --------------------------------------------------------------------------- #
def _normalize_kernel(logits_ref, lse_ref, out_ref):
    out_ref[...] = (logits_ref[...] - lse_ref[...]).astype(out_ref.dtype)


# --------------------------------------------------------------------------- #
# Tile selection
# --------------------------------------------------------------------------- #
def _choose_matmul_tiles(d_model, vocab, budget, compute_bytes,
                         tile_v_target, tile_k_cap, tile_n_target):
    v128 = _round_up(vocab, 128)
    tile_v = min(_round_up(tile_v_target, 128), v128)
    v_pad = _round_up(vocab, tile_v)

    tn = max(16, _round_up(tile_n_target, 16))     # worst-case row tile

    d128 = _round_up(d_model, 128)

    # Footprint that does NOT scale with tile_k (f32 acc + f32 logits out + bias).
    fixed = (tn * tile_v * 4            # accumulator scratch
             + 2 * tn * tile_v * 4      # double-buffered logits output
             + 2 * tile_v * 4           # bias
             + 8 * tn * 4)              # m/l scratch + lse output (approx)
    rem = max(budget - fixed, 0)
    # Double-buffered bf16 x (tn, tk) and W (tk, tile_v) streams.
    max_tk = rem // (2 * compute_bytes * (tn + tile_v))
    max_tk = max(128, (max_tk // 128) * 128)
    if tile_k_cap is not None:
        max_tk = min(max_tk, max(128, _round_up(tile_k_cap, 128)))

    if d128 <= max_tk:
        tile_k = d128                              # single K step (no acc RMW loop)
    else:
        k_steps = _cdiv(d128, max_tk)
        tile_k = _round_up(_cdiv(d128, k_steps), 128)
    d_pad = _round_up(d128, tile_k)
    return tile_v, v_pad, tile_k, d_pad


def _choose_row_tile(n, tile_n_target):
    n16 = _round_up(n, 16)                         # bf16 sublane packing = 16 rows
    target = max(16, _round_up(tile_n_target, 16))
    if n16 <= target:
        return n16
    n_steps = _cdiv(n16, target)
    return _round_up(_cdiv(n16, n_steps), 16)


# --------------------------------------------------------------------------- #
# Generator factory: pads / casts the weight ONCE and returns forward(x).
# --------------------------------------------------------------------------- #
def make_generator(w, b, *, out_dtype=jnp.float32, compute_dtype=jnp.bfloat16,
                   tile_n_target=256, tile_v_target=2048, tile_k_cap=None):
    """Returns forward(x) = log_softmax(x @ w + b, axis=-1).

    w: [d_model, vocab] (nn.Linear weight pre-transposed); b: [vocab].
    x: [batch, seq, d_model] -> [batch, seq, vocab] in `out_dtype`
    (out_dtype=jnp.bfloat16 halves the output HBM writeback if desired).
    """
    d_model, vocab = w.shape
    compute_bytes = jnp.dtype(compute_dtype).itemsize
    out_bytes = jnp.dtype(out_dtype).itemsize

    vmem_cap = _vmem_capacity_bytes()
    budget = int(0.70 * vmem_cap)                  # combined-footprint budget
    vmem_hard_cap = int(0.92 * vmem_cap)           # never exceed physical VMEM

    tile_v, v_pad, tile_k, d_pad = _choose_matmul_tiles(
        d_model, vocab, budget, compute_bytes,
        tile_v_target, tile_k_cap, tile_n_target)

    # Pre-pad + cast the weight/bias once (the W stream dominates HBM traffic;
    # don't re-pay a full read+write of it on every forward call).
    w_p = jax.device_put(
        jnp.pad(w, ((0, d_pad - d_model), (0, v_pad - vocab))).astype(compute_dtype))
    # Padded vocab columns get bias -1e30 so exp() kills them in the lse.
    b_p = jax.device_put(
        jnp.pad(b.astype(jnp.float32), ((0, v_pad - vocab),),
                constant_values=-1e30).reshape(1, v_pad))

    v_tiles = v_pad // tile_v
    k_tiles = d_pad // tile_k

    @jax.jit
    def forward(x):
        batch, seq, dm = x.shape
        assert dm == d_model
        n = batch * seq
        tile_n = _choose_row_tile(n, tile_n_target)
        n_pad = _round_up(n, tile_n)
        n_tiles = n_pad // tile_n

        x2d = x.reshape(n, dm)
        x2d = jnp.pad(x2d, ((0, n_pad - n), (0, d_pad - dm))).astype(compute_dtype)

        # ---------------- Pass 1: logits + per-row logsumexp ---------------- #
        fp1 = int(
            2 * tile_n * tile_k * compute_bytes      # x tiles (double-buffered)
            + 2 * tile_k * tile_v * compute_bytes    # W tiles (double-buffered)
            + 2 * tile_v * 4                         # bias
            + tile_n * tile_v * 4                    # f32 accumulator scratch
            + 2 * tile_n * 4                         # m / l scratch
            + 2 * tile_n * tile_v * 4                # f32 logits output
            + 2 * tile_n * 4                         # lse output
        )
        vmem1 = min(vmem_hard_cap, max(int(1.4 * fp1) + (2 << 20), 32 << 20))

        logits, lse = pl.pallas_call(
            _logits_lse_kernel,
            out_shape=(jax.ShapeDtypeStruct((n_pad, v_pad), jnp.float32),
                       jax.ShapeDtypeStruct((n_pad, 1), jnp.float32)),
            grid_spec=pltpu.PrefetchScalarGridSpec(
                num_scalar_prefetch=0,
                grid=(n_tiles, v_tiles, k_tiles),
                in_specs=[
                    pl.BlockSpec((tile_n, tile_k), lambda i, j, k: (i, k)),  # x
                    pl.BlockSpec((tile_k, tile_v), lambda i, j, k: (k, j)),  # W
                    pl.BlockSpec((1, tile_v), lambda i, j, k: (0, j)),       # bias
                ],
                out_specs=[
                    pl.BlockSpec((tile_n, tile_v), lambda i, j, k: (i, j)),  # logits
                    pl.BlockSpec((tile_n, 1), lambda i, j, k: (i, 0)),       # lse
                ],
                scratch_shapes=[
                    pltpu.VMEM((tile_n, tile_v), jnp.float32),   # accumulator
                    pltpu.VMEM((tile_n, 1), jnp.float32),        # running max
                    pltpu.VMEM((tile_n, 1), jnp.float32),        # running sum-exp
                ],
            ),
            compiler_params=pltpu.CompilerParams(
                dimension_semantics=("parallel", "arbitrary", "arbitrary"),
                vmem_limit_bytes=vmem1,
            ),
        )(x2d, w_p, b_p)

        # ---------------- Pass 2: out = logits - lse ------------------------ #
        fp2 = int(2 * tile_n * tile_v * (4 + out_bytes) + 4 * tile_n * 4)
        vmem2 = min(vmem_hard_cap, max(int(1.4 * fp2) + (2 << 20), 16 << 20))
        # Donate the intermediate logits buffer when dtypes match.
        aliases = ({0: 0} if jnp.dtype(out_dtype) == jnp.dtype(jnp.float32) else {})

        out2d = pl.pallas_call(
            _normalize_kernel,
            out_shape=jax.ShapeDtypeStruct((n_pad, v_pad), out_dtype),
            grid_spec=pltpu.PrefetchScalarGridSpec(
                num_scalar_prefetch=0,
                grid=(n_tiles, v_tiles),
                in_specs=[
                    pl.BlockSpec((tile_n, tile_v), lambda i, j: (i, j)),
                    pl.BlockSpec((tile_n, 1), lambda i, j: (i, 0)),
                ],
                out_specs=pl.BlockSpec((tile_n, tile_v), lambda i, j: (i, j)),
            ),
            input_output_aliases=aliases,
            compiler_params=pltpu.CompilerParams(
                dimension_semantics=("parallel", "parallel"),
                vmem_limit_bytes=vmem2,
            ),
        )(logits, lse)

        return out2d[:n, :vocab].reshape(batch, seq, vocab)

    return forward


if __name__ == "__main__":
    key = jax.random.PRNGKey(0)

    def reference(x, w, b):
        logits = jnp.einsum(
            "bsd,dv->bsv",
            x.astype(jnp.bfloat16), w.astype(jnp.bfloat16),
            preferred_element_type=jnp.float32) + b
        return jax.nn.log_softmax(logits, axis=-1)

    # ---- Test 1: small shapes consistent with the module (single tile). ----
    batch, seq, d_model, vocab = 2, 8, 32, 128
    k1, k2, k3, key = jax.random.split(key, 4)
    x = jax.random.normal(k1, (batch, seq, d_model), dtype=jnp.float32)
    # nn.Linear(d_model, vocab): weight [vocab, d_model]; stored pre-transposed
    # here as [d_model, vocab]; bias [vocab].
    w = jax.random.normal(k2, (d_model, vocab), dtype=jnp.float32) / jnp.sqrt(d_model)
    b = jax.random.normal(k3, (vocab,), dtype=jnp.float32) * 0.01

    fwd = make_generator(w, b, out_dtype=jnp.float32)
    out = jax.block_until_ready(fwd(x))
    assert out.shape == (batch, seq, vocab)
    assert bool(jnp.all(jnp.isfinite(out)))
    ref = reference(x, w, b)
    assert jnp.allclose(out, ref, atol=1e-3, rtol=1e-3), float(jnp.max(jnp.abs(out - ref)))

    # ---- Test 2: force multi-tile rows / vocab / K at small shapes to ----
    # ---- exercise the online-logsumexp + normalization path.          ----
    batch, seq, d_model, vocab = 4, 8, 288, 384
    k1, k2, k3, key = jax.random.split(key, 4)
    x = jax.random.normal(k1, (batch, seq, d_model), dtype=jnp.float32)
    w = jax.random.normal(k2, (d_model, vocab), dtype=jnp.float32) / jnp.sqrt(d_model)
    b = jax.random.normal(k3, (vocab,), dtype=jnp.float32) * 0.01

    fwd2 = make_generator(w, b, out_dtype=jnp.float32,
                          tile_n_target=16, tile_v_target=128, tile_k_cap=128)
    out2 = jax.block_until_ready(fwd2(x))
    assert out2.shape == (batch, seq, vocab)
    assert bool(jnp.all(jnp.isfinite(out2)))
    ref2 = reference(x, w, b)
    assert jnp.allclose(out2, ref2, atol=1e-3, rtol=1e-3), float(jnp.max(jnp.abs(out2 - ref2)))

    # Loose sanity check against full-f32 math as well.
    ref32 = jax.nn.log_softmax(jnp.einsum("bsd,dv->bsv", x, w) + b, axis=-1)
    assert jnp.allclose(out2, ref32, atol=5e-2, rtol=5e-2)

    print("KERNEL_OK")
</pallas_src>

<mosaic_0001>
module attributes {stable_mosaic.version = 11 : i64} {
  func.func @_normalize_kernel(%arg0: i32, %arg1: i32, %arg2: memref<16x128xf32, #tpu.memory_space<vmem>>, %arg3: memref<16x1xf32, #tpu.memory_space<vmem>>, %arg4: memref<16x128xf32, #tpu.memory_space<vmem>>) attributes {dimension_semantics = [#tpu.dimension_semantics<parallel>, #tpu.dimension_semantics<parallel>], iteration_bounds = array<i64: 1, 1>, scalar_prefetch = 0 : i64, scratch_operands = 0 : i64, tpu.core_type = #tpu.core_type<tc>, window_params = [{transform_indices = @transform_0, window_bounds = array<i64: 16, 128>}, {transform_indices = @transform_1, window_bounds = array<i64: 16, 1>}, {transform_indices = @transform_2, window_bounds = array<i64: 16, 128>}]} {
    %c0 = arith.constant 0 : index
    %c0_0 = arith.constant 0 : index
    %0 = vector.load %arg2[%c0, %c0_0] : memref<16x128xf32, #tpu.memory_space<vmem>>, vector<16x128xf32>
    %c0_1 = arith.constant 0 : index
    %c0_2 = arith.constant 0 : index
    %1 = vector.load %arg3[%c0_1, %c0_2] : memref<16x1xf32, #tpu.memory_space<vmem>>, vector<16x1xf32>
    %2 = vector.broadcast %1 : vector<16x1xf32> to vector<16x128xf32>
    %3 = arith.subf %0, %2 : vector<16x128xf32>
    %c0_3 = arith.constant 0 : index
    %c0_4 = arith.constant 0 : index
    %4 = vector.load %arg4[%c0_3, %c0_4] : memref<16x128xf32, #tpu.memory_space<vmem>>, vector<16x128xf32>
    tpu.vector_store %arg4[%c0_3, %c0_4], %3 {strides = array<i32>} : memref<16x128xf32, #tpu.memory_space<vmem>>, vector<16x128xf32>,
    return
  }
  func.func @transform_0(%arg0: i32, %arg1: i32) -> (i32, i32) {
    %c0_i32 = arith.constant 0 : i32
    return %arg0, %arg1 : i32, i32
  }
  func.func @transform_1(%arg0: i32, %arg1: i32) -> (i32, i32) {
    %c0_i32 = arith.constant 0 : i32
    %c0_i32_0 = arith.constant 0 : i32
    return %arg0, %c0_i32 : i32, i32
  }
  func.func @transform_2(%arg0: i32, %arg1: i32) -> (i32, i32) {
    %c0_i32 = arith.constant 0 : i32
    return %arg0, %arg1 : i32, i32
  }
}

module attributes {stable_mosaic.version = 11 : i64} {
  func.func @_logits_lse_kernel(%arg0: i32, %arg1: i32, %arg2: i32, %arg3: memref<16x128xbf16, #tpu.memory_space<vmem>>, %arg4: memref<128x128xbf16, #tpu.memory_space<vmem>>, %arg5: memref<1x128xf32, #tpu.memory_space<vmem>>, %arg6: memref<16x128xf32, #tpu.memory_space<vmem>>, %arg7: memref<16x1xf32, #tpu.memory_space<vmem>>, %arg8: memref<16x128xf32, #tpu.memory_space<vmem>>, %arg9: memref<16x1xf32, #tpu.memory_space<vmem>>, %arg10: memref<16x1xf32, #tpu.memory_space<vmem>>) attributes {dimension_semantics = [#tpu.dimension_semantics<parallel>, #tpu.dimension_semantics<arbitrary>, #tpu.dimension_semantics<arbitrary>], iteration_bounds = array<i64: 1, 1, 1>, scalar_prefetch = 0 : i64, scratch_operands = 3 : i64, tpu.core_type = #tpu.core_type<tc>, window_params = [{transform_indices = @transform_0, window_bounds = array<i64: 16, 128>}, {transform_indices = @transform_1, window_bounds = array<i64: 128, 128>}, {transform_indices = @transform_2, window_bounds = array<i64: 1, 128>}, {transform_indices = @transform_3, window_bounds = array<i64: 16, 128>}, {transform_indices = @transform_4, window_bounds = array<i64: 16, 1>}]} {
    %c0_i32 = arith.constant 0 : i32
    %0 = arith.cmpi eq, %arg1, %c0_i32 : i32
    %c0_i32_0 = arith.constant 0 : i32
    %1 = arith.cmpi eq, %arg2, %c0_i32_0 : i32
    %2 = arith.andi %0, %1 : i1
    %3 = arith.extui %2 : i1 to i32
    %c0_i32_1 = arith.constant 0 : i32
    %4 = arith.cmpi ne, %3, %c0_i32_1 : i32
    scf.if %4 {
      %cst_13 = arith.constant 0xFF800000 : f32
      %17 = vector.broadcast %cst_13 : f32 to vector<16x1xf32>
      %c0_14 = arith.constant 0 : index
      %c0_15 = arith.constant 0 : index
      %18 = vector.load %arg9[%c0_14, %c0_15] : memref<16x1xf32, #tpu.memory_space<vmem>>, vector<16x1xf32>
      tpu.vector_store %arg9[%c0_14, %c0_15], %17 {strides = array<i32>} : memref<16x1xf32, #tpu.memory_space<vmem>>, vector<16x1xf32>,
      %cst_16 = arith.constant 0.000000e+00 : f32
      %19 = vector.broadcast %cst_16 : f32 to vector<16x1xf32>
      %c0_17 = arith.constant 0 : index
      %c0_18 = arith.constant 0 : index
      %20 = vector.load %arg10[%c0_17, %c0_18] : memref<16x1xf32, #tpu.memory_space<vmem>>, vector<16x1xf32>
      tpu.vector_store %arg10[%c0_17, %c0_18], %19 {strides = array<i32>} : memref<16x1xf32, #tpu.memory_space<vmem>>, vector<16x1xf32>,
    } else {
    }
    %c0_i32_2 = arith.constant 0 : i32
    %5 = arith.cmpi eq, %arg2, %c0_i32_2 : i32
    %6 = arith.extui %5 : i1 to i32
    %c0_i32_3 = arith.constant 0 : i32
    %7 = arith.cmpi ne, %6, %c0_i32_3 : i32
    scf.if %7 {
      %cst_13 = arith.constant 0.000000e+00 : f32
      %17 = vector.broadcast %cst_13 : f32 to vector<16x128xf32>
      %c0_14 = arith.constant 0 : index
      %c0_15 = arith.constant 0 : index
      %18 = vector.load %arg8[%c0_14, %c0_15] : memref<16x128xf32, #tpu.memory_space<vmem>>, vector<16x128xf32>
      tpu.vector_store %arg8[%c0_14, %c0_15], %17 {strides = array<i32>} : memref<16x128xf32, #tpu.memory_space<vmem>>, vector<16x128xf32>,
    } else {
    }
    %c0 = arith.constant 0 : index
    %c0_4 = arith.constant 0 : index
    %8 = vector.load %arg8[%c0, %c0_4] : memref<16x128xf32, #tpu.memory_space<vmem>>, vector<16x128xf32>
    %c0_5 = arith.constant 0 : index
    %c0_6 = arith.constant 0 : index
    %9 = vector.load %arg3[%c0_5, %c0_6] : memref<16x128xbf16, #tpu.memory_space<vmem>>, vector<16x128xbf16>
    %c0_7 = arith.constant 0 : index
    %c0_8 = arith.constant 0 : index
    %10 = vector.load %arg4[%c0_7, %c0_8] : memref<128x128xbf16, #tpu.memory_space<vmem>>, vector<128x128xbf16>
    %cst = arith.constant dense<0.000000e+00> : vector<16x128xf32>
    %11 = tpu.matmul %9, %10, %cst {dimension_numbers = #tpu.dot_dimension_numbers<[1], [0], [0], [1], [0, 0, 1, 1], [], []>} : vector<16x128xbf16>, vector<128x128xbf16>, vector<16x128xf32> -> vector<16x128xf32>
    %12 = arith.addf %8, %11 : vector<16x128xf32>
    %c0_9 = arith.constant 0 : index
    %c0_10 = arith.constant 0 : index
    %13 = vector.load %arg8[%c0_9, %c0_10] : memref<16x128xf32, #tpu.memory_space<vmem>>, vector<16x128xf32>
    tpu.vector_store %arg8[%c0_9, %c0_10], %12 {strides = array<i32>} : memref<16x128xf32, #tpu.memory_space<vmem>>, vector<16x128xf32>,
    %c0_i32_11 = arith.constant 0 : i32
    %14 = arith.cmpi eq, %arg2, %c0_i32_11 : i32
    %15 = arith.extui %14 : i1 to i32
    %c0_i32_12 = arith.constant 0 : i32
    %16 = arith.cmpi ne, %15, %c0_i32_12 : i32
    scf.if %16 {
      %c0_13 = arith.constant 0 : index
      %c0_14 = arith.constant 0 : index
      %17 = vector.load %arg8[%c0_13, %c0_14] : memref<16x128xf32, #tpu.memory_space<vmem>>, vector<16x128xf32>
      %c0_15 = arith.constant 0 : index
      %c0_16 = arith.constant 0 : index
      %18 = vector.load %arg5[%c0_15, %c0_16] : memref<1x128xf32, #tpu.memory_space<vmem>>, vector<1x128xf32>
      %19 = vector.broadcast %18 : vector<1x128xf32> to vector<16x128xf32>
      %20 = arith.addf %17, %19 : vector<16x128xf32>
      %c0_17 = arith.constant 0 : index
      %c0_18 = arith.constant 0 : index
      %21 = vector.load %arg6[%c0_17, %c0_18] : memref<16x128xf32, #tpu.memory_space<vmem>>, vector<16x128xf32>
      tpu.vector_store %arg6[%c0_17, %c0_18], %20 {strides = array<i32>} : memref<16x128xf32, #tpu.memory_space<vmem>>, vector<16x128xf32>,
      %c0_19 = arith.constant 0 : index
      %c0_20 = arith.constant 0 : index
      %22 = vector.load %arg9[%c0_19, %c0_20] : memref<16x1xf32, #tpu.memory_space<vmem>>, vector<16x1xf32>
      %cst_21 = arith.constant dense<0xFF800000> : vector<16xf32>
      %23 = vector.multi_reduction <maximumf>, %20, %cst_21 [1] : vector<16x128xf32> to vector<16xf32>
      %24 = vector.shape_cast %23 : vector<16xf32> to vector<16x1xf32>
      %25 = arith.maximumf %22, %24 : vector<16x1xf32>
      %c0_22 = arith.constant 0 : index
      %c0_23 = arith.constant 0 : index
      %26 = vector.load %arg10[%c0_22, %c0_23] : memref<16x1xf32, #tpu.memory_space<vmem>>, vector<16x1xf32>
      %27 = arith.subf %22, %25 : vector<16x1xf32>
      %28 = math.exp %27 : vector<16x1xf32>
      %29 = arith.mulf %26, %28 : vector<16x1xf32>
      %30 = vector.broadcast %25 : vector<16x1xf32> to vector<16x128xf32>
      %31 = arith.subf %20, %30 : vector<16x128xf32>
      %32 = math.exp %31 : vector<16x128xf32>
      %cst_24 = arith.constant dense<0.000000e+00> : vector<16xf32>
      %33 = vector.multi_reduction <add>, %32, %cst_24 [1] : vector<16x128xf32> to vector<16xf32>
      %34 = vector.shape_cast %33 : vector<16xf32> to vector<16x1xf32>
      %35 = arith.addf %29, %34 : vector<16x1xf32>
      %c0_25 = arith.constant 0 : index
      %c0_26 = arith.constant 0 : index
      %36 = vector.load %arg10[%c0_25, %c0_26] : memref<16x1xf32, #tpu.memory_space<vmem>>, vector<16x1xf32>
      tpu.vector_store %arg10[%c0_25, %c0_26], %35 {strides = array<i32>} : memref<16x1xf32, #tpu.memory_space<vmem>>, vector<16x1xf32>,
      %c0_27 = arith.constant 0 : index
      %c0_28 = arith.constant 0 : index
      %37 = vector.load %arg9[%c0_27, %c0_28] : memref<16x1xf32, #tpu.memory_space<vmem>>, vector<16x1xf32>
      tpu.vector_store %arg9[%c0_27, %c0_28], %25 {strides = array<i32>} : memref<16x1xf32, #tpu.memory_space<vmem>>, vector<16x1xf32>,
      %c0_i32_29 = arith.constant 0 : i32
      %38 = arith.cmpi eq, %arg1, %c0_i32_29 : i32
      %39 = arith.extui %38 : i1 to i32
      %c0_i32_30 = arith.constant 0 : i32
      %40 = arith.cmpi ne, %39, %c0_i32_30 : i32
      scf.if %40 {
        %c0_31 = arith.constant 0 : index
        %c0_32 = arith.constant 0 : index
        %41 = vector.load %arg9[%c0_31, %c0_32] : memref<16x1xf32, #tpu.memory_space<vmem>>, vector<16x1xf32>
        %c0_33 = arith.constant 0 : index
        %c0_34 = arith.constant 0 : index
        %42 = vector.load %arg10[%c0_33, %c0_34] : memref<16x1xf32, #tpu.memory_space<vmem>>, vector<16x1xf32>
        %43 = math.log %42 : vector<16x1xf32>
        %44 = arith.addf %41, %43 : vector<16x1xf32>
        %c0_35 = arith.constant 0 : index
        %c0_36 = arith.constant 0 : index
        %45 = vector.load %arg7[%c0_35, %c0_36] : memref<16x1xf32, #tpu.memory_space<vmem>>, vector<16x1xf32>
        tpu.vector_store %arg7[%c0_35, %c0_36], %44 {strides = array<i32>} : memref<16x1xf32, #tpu.memory_space<vmem>>, vector<16x1xf32>,
      } else {
      }
    } else {
    }
    return
  }
  func.func @transform_0(%arg0: i32, %arg1: i32, %arg2: i32) -> (i32, i32) {
    %c0_i32 = arith.constant 0 : i32
    return %arg0, %arg2 : i32, i32
  }
  func.func @transform_1(%arg0: i32, %arg1: i32, %arg2: i32) -> (i32, i32) {
    %c0_i32 = arith.constant 0 : i32
    return %arg2, %arg1 : i32, i32
  }
  func.func @transform_2(%arg0: i32, %arg1: i32, %arg2: i32) -> (i32, i32) {
    %c0_i32 = arith.constant 0 : i32
    %c0_i32_0 = arith.constant 0 : i32
    return %c0_i32, %arg1 : i32, i32
  }
  func.func @transform_3(%arg0: i32, %arg1: i32, %arg2: i32) -> (i32, i32) {
    %c0_i32 = arith.constant 0 : i32
    return %arg0, %arg1 : i32, i32
  }
  func.func @transform_4(%arg0: i32, %arg1: i32, %arg2: i32) -> (i32, i32) {
    %c0_i32 = arith.constant 0 : i32
    %c0_i32_0 = arith.constant 0 : i32
    return %arg0, %c0_i32 : i32, i32
  }
}

</mosaic_0001>

<bundles_post_ra>
// kernel: forward.3
= control target key start
LH: loop header
LB: loop body
LE: loop exit
PB: predicated region body
PF: predicated region fallthrough
CT: control target
= control target key end

     0   :  { %v35_v0 = vmov 0   ;;  %s69_s1 = inlined_call_operand.vmem [shape: f32[16,1], index: 1, kind: input, shape index: {}]   ;;  %s70_s0 = inlined_call_operand.vmem [shape: f32[16,128], index: 0, kind: input, shape index: {}, may-alias: {0,2}]   ;;  %s71_s2 = inlined_call_operand.vmem [shape: f32[16,128], index: 2, kind: output, shape index: {}, may-alias: {0,2}]  }
   0x1   :  { %34 = vset.pattern.permute.xlu0 %v35_v0  ;;  %v13_v1 = vld [vmem:[%s69_s1] sm:$0xff]  ;;  %v14_v2 = vld [vmem:[%s69_s1 + $0x8] sm:$0xff] }
   0x2   :  { %17 = vperm.xlu0 %34, %v13_v1   ;;  %v11_v3 = vld [vmem:[%s70_s0] sm:$0xff]  ;;  %v12_v6 = vld [vmem:[%s70_s0 + $0x8] sm:$0xff] }
   0x6   :  { %22 = vperm.xlu0 %34, %v14_v2  }
  0x7d   :  { %v18_v4 = vpop.permute.xlu0 %17 }
  0x7e   :  { %v25_v5 = vsub.f32 %v11_v3, %v18_v4 }
  0x80   :  { %27 = vst [vmem:[%s71_s2] sm:$0xff] %v25_v5 }
  0x81   :  { %v23_v7 = vpop.permute.xlu0 %22 }
  0x82   :  { %v26_v8 = vsub.f32 %v12_v6, %v23_v7 }
  0x84   :  { %28 = vst [vmem:[%s71_s2 + $0x8] sm:$0xff] %v26_v8 }

// kernel: forward.2
= control target key start
LH: loop header
LB: loop body
LE: loop exit
PB: predicated region body
PF: predicated region fallthrough
CT: control target
= control target key end

     0   :  { %10 = vsyncpa [#allocation6], 0  ;;  %s342_s15 = smov [#allocation5]   ;;  %s405_s0 = inlined_call_operand.vmem [shape: bf16[16,128], index: 0, kind: input, shape index: {}]   ;;  %s406_s1 = inlined_call_operand.hbm [shape: bf16[128,128], index: 1, kind: input, shape index: {}]   ;;  %s407_s2 = inlined_call_operand.vmem [shape: f32[1,128], index: 2, kind: input, shape index: {}]   ;;  %s408_s3 = inlined_call_operand.vmem [shape: f32[16,128], index: 3, kind: output, shape index: {0}]   ;;  %s409_s4 = inlined_call_operand.vmem [shape: f32[16,1], index: 4, kind: output, shape index: {1}]  }
   0x1   :  { %s18_s16 = sshll.u32 %s342_s15, 4  ;;  %s19_s16 = int_to_ptr.vmem [resolvable:$true] %s18_s16 }
   0x2   :  { %s328_s17 = scalar_lea.vmem %s19_s16, 1024  ;;  %p333_p1 = scmp.lt.s32.totalorder %s19_s16, %s19_s16 }
   0x3   :  { %p329_p0 = scmp.ne.s32.totalorder %s19_s16, %s328_s17  ;;  %p334_p2 = scmp.lt.s32.totalorder %s328_s17, %s328_s17 }
   0x5   :  { %p335_p3 = por %p334_p2, %p333_p1 }
   0x7   :  { %p336_p4 = pnand %p335_p3, %p329_p0 }
   0x9   :  { %339 = shalt.err (!%p336_p4)
}
   0xa   :  { %s343_s18 = smov 64   ;;  %s344_s19 = smov 4  }
   0xb   :  { %24 = dma.hbm_to_vmem [thread:$0]  %s406_s1, 1024, %s19_s16, [#allocation6], %s343_s18, %s343_s18, %s344_s19  }
   0xc   :  { %340 = dma.done.wait [#allocation6], 1024  }
   0xd   :  { %341 = vsyncadd [#allocation6], 4294966272  ;;  %v345_v0 = vmov 0.0   ;;  %vm346_vm0 = vmmov 0   ;;  %v299_v1 = vld [vmem:[#allocation5 + $0x38] sm:$0xff]   ;;  %v300_v2 = vld [vmem:[#allocation5 + $0x30] sm:$0xff]  }
   0xe   :  { %270 = vmatprep.subr.bf16.mxu0 %v345_v0  ;;  %286 = vmatprep.mubr.msk.bf16.mxu0 %vm346_vm0, %v345_v0  ;;  %v301_v3 = vld [vmem:[#allocation5 + $0x28] sm:$0xff]   ;;  %v302_v4 = vld [vmem:[#allocation5 + $0x20] sm:$0xff]   ;;  %v303_v5 = vld [vmem:[#allocation5 + $0x18] sm:$0xff]   ;;  %vm37_vm1 = vcmask 7168   ;;  %v347_v10 = vmov -inf   ;;  %v348_v18 = vmov 0  }
   0xf   :  { %271 = vmatpush3.bf16.msra.mxu0 %v299_v1  ;;  %v304_v6 = vld [vmem:[#allocation5 + $0x10] sm:$0xff]   ;;  %v305_v7 = vld [vmem:[#allocation5 + $0x8] sm:$0xff]   ;;  %v306_v8 = vld [vmem:[#allocation5] sm:$0xff]   ;;  %38 = vst.msk [vmem:[#allocation3] sm:$0xff] %vm37_vm1, %v347_v10  ;;  %297 = vset.pattern.permute.xlu1 %v348_v18 }
  0x10   :  { %272 = vmatprep.subr.bf16.mxu0 %v345_v0  ;;  %v307_v9 = vld [vmem:[%s405_s0] sm:$0xff]   ;;  %39 = vst.msk [vmem:[#allocation3 + $0x8] sm:$0xff] %vm37_vm1, %v347_v10  ;;  %40 = vst.msk [vmem:[#allocation4] sm:$0xff] %vm37_vm1, %v345_v0  ;;  %298 = vset.pattern.permute.xlu0 %v348_v18 }
  0x11   :  { %41 = vst.msk [vmem:[#allocation4 + $0x8] sm:$0xff] %vm37_vm1, %v345_v0  ;;  %v260_v11 = vld [vmem:[%s407_s2] ss:$0 sm:$0xff] }
  0x13   :  { %273 = vmatpush3.bf16.msra.mxu0 %v300_v2 }
  0x14   :  { %274 = vmatprep.subr.bf16.mxu0 %v345_v0 }
  0x16   :  { %v182_v19 = vld [vmem:[#allocation3] sm:$0xff] }
  0x17   :  { %275 = vmatpush3.bf16.msra.mxu0 %v301_v3  ;;  %v183_v22 = vld [vmem:[#allocation3 + $0x8] sm:$0xff]  ;;  %v190_v38 = vld [vmem:[#allocation4] sm:$0xff] }
  0x18   :  { %276 = vmatprep.subr.bf16.mxu0 %v345_v0  ;;  %v191_v42 = vld [vmem:[#allocation4 + $0x8] sm:$0xff] }
  0x1b   :  { %277 = vmatpush3.bf16.msra.mxu0 %v302_v4 }
  0x1c   :  { %278 = vmatprep.subr.bf16.mxu0 %v345_v0 }
  0x1f   :  { %279 = vmatpush3.bf16.msra.mxu0 %v303_v5 }
  0x20   :  { %280 = vmatprep.subr.bf16.mxu0 %v345_v0 }
  0x23   :  { %281 = vmatpush3.bf16.msra.mxu0 %v304_v6 }
  0x24   :  { %282 = vmatprep.subr.bf16.mxu0 %v345_v0 }
  0x27   :  { %283 = vmatpush3.bf16.msra.mxu0 %v305_v7 }
  0x28   :  { %284 = vmatprep.subr.bf16.mxu0 %v345_v0 }
  0x2b   :  { %285 = vmatpush3.bf16.msra.mxu0 %v306_v8 }
  0x2e   :  { %287 = vmatmul.mubr.bf16.vlgmr.msra.gmra.mxu0 %v307_v9 }
  0xee   :  { %v155_v12 = vpop.f32.mrf.mxu0 }
  0xef   :  { %v178_v13 = vadd.f32 %v260_v11, %v155_v12 }
  0xf0   :  { %v288_v14 = vpop.f32.mrf.mxu0 }
  0xf1   :  { %180 = vst [vmem:[%s408_s3] sm:$0xff] %v178_v13  ;;  %184 = vmax.xlane.f32.xlu0 %v178_v13 }
  0xf2   :  { %v158_v15 = vpop.f32.mrf.mxu0 }
  0xf3   :  { %v179_v16 = vadd.f32 %v260_v11, %v158_v15 }
  0xf4   :  { %v289_v17 = vpop.f32.mrf.mxu0 }
  0xf5   :  { %181 = vst [vmem:[%s408_s3 + $0x8] sm:$0xff] %v179_v16  ;;  %186 = vmax.xlane.f32.xlu0 %v179_v16 }
 0x17a   :  { %v185_v20 = vpop.xlane.xlu0 %184 }
 0x17b   :  { %v188_v21 = vmax.f32 %v182_v19, %v185_v20 }
 0x17d   :  { %v192_v23 = vsub.f32 %v182_v19, %v188_v21  ;;  %225 = vst.msk [vmem:[#allocation3] sm:$0xff] %vm37_vm1, %v188_v21  ;;  %202 = vperm.xlu1 %297, %v188_v21  }
 0x17e   :  { %v187_v24 = vpop.xlane.xlu0 %186 }
 0x17f   :  { %v189_v25 = vmax.f32 %v183_v22, %v187_v24  ;;  %v194_v35 = vmul.f32 1.442695, %v192_v23 }
 0x181   :  { %v193_v26 = vsub.f32 %v183_v22, %v189_v25  ;;  %226 = vst.msk [vmem:[#allocation3 + $0x8] sm:$0xff] %vm37_vm1, %v189_v25  ;;  %207 = vperm.xlu1 %297, %v189_v25  }
 0x183   :  { %v196_v36 = vmul.f32 1.442695, %v193_v26 }
 0x184   :  { %v230_v51 = vld [vmem:[#allocation3] sm:$0xff] }
 0x188   :  { %v231_v55 = vld [vmem:[#allocation3 + $0x8] sm:$0xff] }
 0x1f8   :  { %v203_v27 = vpop.permute.xlu1 %202 }
 0x1f9   :  { %v210_v28 = vsub.f32 %v178_v13, %v203_v27 }
 0x1fb   :  { %v212_v29 = vmul.f32 1.442695, %v210_v28 }
 0x1fc   :  { %v208_v30 = vpop.permute.xlu1 %207 }
 0x1fd   :  { %308 = vpow2.f32 %v212_v29  ;;  %v211_v31 = vsub.f32 %v179_v16, %v208_v30 }
 0x1ff   :  { %v214_v32 = vmul.f32 1.442695, %v211_v31 }
 0x201   :  { %310 = vpow2.f32 %v214_v32 }
 0x202   :  { %312 = vpow2.f32 %v194_v35 }
 0x203   :  { %314 = vpow2.f32 %v196_v36 }
 0x20a   :  { %v309_v33 = vpop.eup %308 }
 0x20b   :  { %216 = vadd.xlane.f32.xlu0 %v309_v33 }
 0x20e   :  { %v311_v34 = vpop.eup %310 }
 0x20f   :  { %218 = vadd.xlane.f32.xlu1 %v311_v34  ;;  %v313_v37 = vpop.eup %312 }
 0x210   :  { %v198_v39 = vmul.f32 %v313_v37, %v190_v38  ;;  %v315_v40 = vpop.eup %314 }
 0x211   :  { %v199_v44 = vmul.f32 %v315_v40, %v191_v42 }
 0x294   :  { %v217_v41 = vpop.xlane.xlu0 %216 }
 0x295   :  { %v220_v43 = vadd.f32 %v217_v41, %v198_v39 }
 0x297   :  { %223 = vst.msk [vmem:[#allocation4] sm:$0xff] %vm37_vm1, %v220_v43 }
 0x298   :  { %v219_v45 = vpop.xlane.xlu1 %218 }
 0x299   :  { %v221_v46 = vadd.f32 %v219_v45, %v199_v44 }
 0x29b   :  { %224 = vst.msk [vmem:[#allocation4 + $0x8] sm:$0xff] %vm37_vm1, %v221_v46 }
 0x29e   :  { %v232_v47 = vld [vmem:[#allocation4] sm:$0xff] }
 0x29f   :  { %316 = vlog2.f32 %v232_v47 }
 0x2a2   :  { %v233_v48 = vld [vmem:[#allocation4 + $0x8] sm:$0xff] }
 0x2a3   :  { %318 = vlog2.f32 %v233_v48 }
 0x2ac   :  { %v317_v49 = vpop.eup %316 }
 0x2ad   :  { %v235_v50 = vmul.f32 0.6931472, %v317_v49 }
 0x2af   :  { %v238_v52 = vadd.f32 %v235_v50, %v230_v51 }
 0x2b0   :  { %v319_v53 = vpop.eup %318 }
 0x2b1   :  { %240 = vst.msk [vmem:[%s409_s4] sm:$0xff] %vm37_vm1, %v238_v52  ;;  %v237_v54 = vmul.f32 0.6931472, %v319_v53 }
 0x2b3   :  { %v239_v56 = vadd.f32 %v237_v54, %v231_v55 }
 0x2b5   :  { %241 = vst.msk [vmem:[%s409_s4 + $0x8] sm:$0xff] %vm37_vm1, %v239_v56 }
 0x2b6   :  { %250 = vsyncpa [#allocation6], 1 }

</bundles_post_ra>
